<compile_context>
chip_gen: v7x
topology: tpu7x:2x2x1
jax: 0.10.0
libtpu: 0.0.40
codegen_flags: <defaults>
</compile_context>

<pallas_src>
import functools

import jax
import jax.numpy as jnp
from jax.experimental import pallas as pl
from jax.experimental.pallas import tpu as pltpu


_NUM_CORES = 2               # v7x has 2 TensorCores; harmless serial loop elsewhere.
_TARGET_BLOCK_BYTES = 4 << 20
_DEFAULT_VMEM_CAP = 64 << 20  # conservative (v7x) fallback if get_tpu_info fails.


def _round_up(x, m):
    return ((x + m - 1) // m) * m


def _cdiv(a, b):
    return -(-a // b)


def _vmem_capacity_bytes():
    try:
        return int(pltpu.get_tpu_info().vmem_capacity_bytes)
    except Exception:
        return _DEFAULT_VMEM_CAP


# ------------------------------------------------------------ kernel helpers --

def _tree_sum_rows(x):
    """(R, C) f32 -> (8, C): pure vreg+vreg VALU adds, no cross-lane work."""
    r, c = x.shape
    return x.reshape(r // 8, 8, c).sum(axis=0)


def _bce_with_logits(x, y):
    # Numerically stable BCEWithLogits: max(x,0) - x*y + log1p(exp(-|x|)).
    return jnp.maximum(x, 0.0) - x * y + jnp.log1p(jnp.exp(-jnp.abs(x)))


# --------------------------------------------------------- two-pass kernels --

def _pass1_kernel(s_ref, t_ref, y_ref, ad_out_ref, bce_out_ref, ad_acc, bce_acc,
                  *, block_rows, blocks_per_core, n_rows, needs_mask):
    """Per-core sum(|t - s|) and sum(BCEWithLogits(s, y)) (temperature-free)."""
    c = pl.program_id(0)
    i = pl.program_id(1)
    j = pl.program_id(2)

    @pl.when((i == 0) & (j == 0))
    def _():
        ad_acc[...] = jnp.zeros_like(ad_acc)
        bce_acc[...] = jnp.zeros_like(bce_acc)

    s = s_ref[...].astype(jnp.float32)
    t = t_ref[...].astype(jnp.float32)
    y = y_ref[...].astype(jnp.float32)

    ad = jnp.abs(t - s)
    bce = _bce_with_logits(s, y)

    if needs_mask:
        row0 = (c * blocks_per_core + i) * block_rows  # logical (unclamped) rows
        rows = jax.lax.broadcasted_iota(jnp.int32, s.shape, 0) + row0
        valid = rows < n_rows
        ad = jnp.where(valid, ad, 0.0)
        bce = jnp.where(valid, bce, 0.0)

    ad_acc[...] += _tree_sum_rows(ad)
    bce_acc[...] += _tree_sum_rows(bce)

    @pl.when((i == pl.num_programs(1) - 1) & (j == pl.num_programs(2) - 1))
    def _():
        ad_out_ref[...] = jnp.full(ad_out_ref.shape, jnp.sum(ad_acc[...]), jnp.float32)
        bce_out_ref[...] = jnp.full(bce_out_ref.shape, jnp.sum(bce_acc[...]), jnp.float32)


def _pass2_kernel(hinvt_ref, s_ref, t_ref, sq_out_ref, sq_acc,
                  *, block_rows, blocks_per_core, n_rows, needs_mask):
    """Per-core sum((tanh(s/2T) - tanh(t/2T))^2); 0.25 and 1/n applied outside."""
    c = pl.program_id(0)
    i = pl.program_id(1)
    j = pl.program_id(2)

    @pl.when((i == 0) & (j == 0))
    def _():
        sq_acc[...] = jnp.zeros_like(sq_acc)

    h = hinvt_ref[0, 0]  # 1/(2T) scalar from SMEM
    s = s_ref[...].astype(jnp.float32)
    t = t_ref[...].astype(jnp.float32)
    # sigmoid(a)-sigmoid(b) = 0.5*(tanh(a/2)-tanh(b/2)); 0.5^2 folded into wrapper.
    d = jnp.tanh(s * h) - jnp.tanh(t * h)
    sq = d * d

    if needs_mask:
        row0 = (c * blocks_per_core + i) * block_rows
        rows = jax.lax.broadcasted_iota(jnp.int32, s.shape, 0) + row0
        sq = jnp.where(rows < n_rows, sq, 0.0)

    sq_acc[...] += _tree_sum_rows(sq)

    @pl.when((i == pl.num_programs(1) - 1) & (j == pl.num_programs(2) - 1))
    def _():
        sq_out_ref[...] = jnp.full(sq_out_ref.shape, jnp.sum(sq_acc[...]), jnp.float32)


# -------------------------------------------------------------- fused kernel --

def _fused_kernel(s_ref, t_ref, y_ref, out_ref,
                  s_copy, t_copy, ad_acc, bce_acc, sq_acc, hinvt_sm,
                  *, block_rows, n_rows, n_elems, base_t, min_t, alpha, needs_mask):
    """Single-call fused loss: phase 0 streams HBM once (and stashes s/t in
    VMEM), phase 1 re-reads the resident copies with the in-kernel temperature."""
    phase = pl.program_id(0)
    i = pl.program_id(1)
    last = pl.num_programs(1) - 1

    @pl.when((phase == 0) & (i == 0))
    def _():
        ad_acc[...] = jnp.zeros_like(ad_acc)
        bce_acc[...] = jnp.zeros_like(bce_acc)
        sq_acc[...] = jnp.zeros_like(sq_acc)

    row0 = pl.multiple_of(i * block_rows, block_rows)
    if needs_mask:
        rows = jax.lax.broadcasted_iota(jnp.int32, s_ref.shape, 0) + i * block_rows
        valid = rows < n_rows

    def _mask(x):
        return jnp.where(valid, x, 0.0) if needs_mask else x

    @pl.when(phase == 0)
    def _():
        s = s_ref[...]
        t = t_ref[...]
        # Keep native-dtype tiles resident so phase 1 needs no HBM sweep.
        s_copy[pl.ds(row0, block_rows), :] = s
        t_copy[pl.ds(row0, block_rows), :] = t

        sf = s.astype(jnp.float32)
        tf = t.astype(jnp.float32)
        yf = y_ref[...].astype(jnp.float32)
        ad_acc[...] += _tree_sum_rows(_mask(jnp.abs(tf - sf)))
        bce_acc[...] += _tree_sum_rows(_mask(_bce_with_logits(sf, yf)))

        @pl.when(i == last)
        def _():
            disc = jnp.sum(ad_acc[...]) / n_elems
            temp = jnp.maximum(base_t / (1.0 + disc), min_t)
            hinvt_sm[0] = 0.5 / temp

    @pl.when(phase == 1)
    def _():
        h = hinvt_sm[0]
        sf = s_copy[pl.ds(row0, block_rows), :].astype(jnp.float32)
        tf = t_copy[pl.ds(row0, block_rows), :].astype(jnp.float32)
        d = jnp.tanh(sf * h) - jnp.tanh(tf * h)
        sq_acc[...] += _tree_sum_rows(_mask(d * d))

        @pl.when(i == last)
        def _():
            distill = 0.25 * jnp.sum(sq_acc[...]) / n_elems
            ce = jnp.sum(bce_acc[...]) / n_elems
            out_ref[...] = jnp.full(out_ref.shape,
                                    alpha * distill + (1.0 - alpha) * ce,
                                    jnp.float32)


# ------------------------------------------------------------------ wrapper --

def multilabel_distillation_loss(student_logits, teacher_logits, true_labels,
                                 base_temperature=5.0, min_temperature=1.0,
                                 alpha=0.5, fuse=None):
    """JAX/Pallas equivalent of the PyTorch module's forward()."""
    # Labels stay in native dtype (the .float() of the reference happens
    # in-kernel).  bool is reinterpreted as int8 (same byte layout) to avoid
    # i1 handling inside Mosaic.
    if true_labels.dtype == jnp.bool_:
        true_labels = true_labels.astype(jnp.int8)

    B, C = student_logits.shape
    n_elems = B * C

    itemsizes = [jnp.dtype(a.dtype).itemsize
                 for a in (student_logits, teacher_logits, true_labels)]
    max_isz = max(itemsizes)
    # Sublane multiple for the narrowest dtype (8 f32 / 16 bf16 / 32 int8).
    sublane = max(8, max(32 // isz for isz in itemsizes))

    # Tiny-batch corner case only: guarantee at least one sublane group of rows
    # so the (8,128) block constraint holds; masking zeroes the pad rows.
    if B < sublane:
        pad = ((0, sublane - B), (0, 0))
        student_logits = jnp.pad(student_logits, pad)
        teacher_logits = jnp.pad(teacher_logits, pad)
        true_labels = jnp.pad(true_labels, pad)
    phys_rows = student_logits.shape[0]

    budget = int(0.75 * _vmem_capacity_bytes())

    # ---------------- fused single-call plan (full-C blocks) -----------------
    row_cap_f = _round_up(phys_rows, sublane)
    rows_fit_f = max(sublane,
                     (_TARGET_BLOCK_BYTES // (C * max_isz)) // sublane * sublane)
    block_rows_f = max(sublane, min(row_cap_f, rows_fit_f))
    nblocks_f = _cdiv(phys_rows, block_rows_f)
    covered_f = nblocks_f * block_rows_f
    resident = covered_f * C * (itemsizes[0] + itemsizes[1])
    pipeline_f = 2 * block_rows_f * C * sum(itemsizes)
    needed_f = resident + pipeline_f + 3 * 8 * C * 4 + 8 * 128 * 4 + (2 << 20)
    fused_ok = needed_f <= budget
    if fuse is None:
        fuse = fused_ok
    fuse = bool(fuse) and fused_ok

    if fuse:
        needs_mask = covered_f != B
        in_tile = pl.BlockSpec((block_rows_f, C),
                               lambda p, i: (i * (1 - p), 0))  # phase 1: stay on blk 0
        kernel = functools.partial(
            _fused_kernel, block_rows=block_rows_f, n_rows=B,
            n_elems=float(n_elems), base_t=float(base_temperature),
            min_t=float(min_temperature), alpha=float(alpha),
            needs_mask=needs_mask)
        out = pl.pallas_call(
            kernel,
            out_shape=jax.ShapeDtypeStruct((8, 128), jnp.float32),
            grid=(2, nblocks_f),
            in_specs=[in_tile, in_tile, in_tile],
            out_specs=pl.BlockSpec((8, 128), lambda p, i: (0, 0)),
            scratch_shapes=[
                pltpu.VMEM((covered_f, C), student_logits.dtype),
                pltpu.VMEM((covered_f, C), teacher_logits.dtype),
                pltpu.VMEM((8, C), jnp.float32),
                pltpu.VMEM((8, C), jnp.float32),
                pltpu.VMEM((8, C), jnp.float32),
                pltpu.SMEM((1,), jnp.float32),
            ],
            compiler_params=pltpu.CompilerParams(
                dimension_semantics=("arbitrary", "arbitrary"),
                vmem_limit_bytes=int(min(budget, max(32 << 20, needed_f + (4 << 20))))),
        )(student_logits, teacher_logits, true_labels)
        return out[0, 0]

    # -------------------- two-pass plan (2-core parallel) --------------------
    # Optional C chunking for extremely wide label spaces (only when a minimal
    # (sublane, C) block would already exceed the target block size).
    if C % 128 == 0 and C * sublane * max_isz > _TARGET_BLOCK_BYTES:
        desired = max(128, min(C, (_TARGET_BLOCK_BYTES // (sublane * max_isz)) // 128 * 128))
        c_block = 128
        for cand in range(desired, 127, -128):
            if C % cand == 0:
                c_block = cand
                break
    else:
        # TODO(synk): very wide C that is not a multiple of 128 is not chunked;
        # it falls back to (sublane, C) blocks.
        c_block = C
    c_blocks = C // c_block

    row_cap = _round_up(_cdiv(phys_rows, _NUM_CORES), sublane)
    rows_fit = max(sublane,
                   (_TARGET_BLOCK_BYTES // (c_block * max_isz)) // sublane * sublane)
    block_rows = max(sublane, min(row_cap, rows_fit))
    nblocks_valid = _cdiv(phys_rows, block_rows)
    bpc = _cdiv(nblocks_valid, _NUM_CORES)          # blocks per core
    covered = _NUM_CORES * bpc * block_rows
    needs_mask = covered != B
    last_blk = nblocks_valid - 1

    def logit_map(c, i, j):
        # Clamp so DMAs always read in-range data; fully-OOB logical blocks
        # are zeroed by the in-kernel row mask.
        return (jnp.minimum(c * bpc + i, last_blk), j)

    tile = pl.BlockSpec((block_rows, c_block), logit_map)
    grid = (_NUM_CORES, bpc, c_blocks)
    part_shape = jax.ShapeDtypeStruct((_NUM_CORES * 8, 128), jnp.float32)
    part_spec = pl.BlockSpec((8, 128), lambda c, i, j: (c, 0))

    block_bytes = block_rows * c_block * sum(itemsizes)
    needed = 2 * block_bytes + 3 * 8 * c_block * 4 + _NUM_CORES * 8 * 128 * 4 * 2
    vmem_limit = int(min(budget, max(32 << 20, needed + (4 << 20))))
    cparams = pltpu.CompilerParams(
        dimension_semantics=("parallel", "arbitrary", "arbitrary"),
        vmem_limit_bytes=vmem_limit)

    # --- pass 1: |t-s| sum + BCE sum (temperature-independent) ---------------
    k1 = functools.partial(_pass1_kernel, block_rows=block_rows,
                           blocks_per_core=bpc, n_rows=B, needs_mask=needs_mask)
    ad_part, bce_part = pl.pallas_call(
        k1,
        out_shape=(part_shape, part_shape),
        grid=grid,
        in_specs=[tile, tile, tile],
        out_specs=(part_spec, part_spec),
        scratch_shapes=[pltpu.VMEM((8, c_block), jnp.float32),
                        pltpu.VMEM((8, c_block), jnp.float32)],
        compiler_params=cparams,
    )(student_logits, teacher_logits, true_labels)

    absdiff_sum = jnp.sum(ad_part[::8, 0])           # one scalar per core
    bce_sum = jnp.sum(bce_part[::8, 0])

    discrepancy = absdiff_sum / n_elems
    temperature = jnp.maximum(base_temperature / (1.0 + discrepancy),
                              min_temperature)
    half_inv_t = (0.5 / temperature).reshape(1, 1).astype(jnp.float32)

    # --- pass 2: distillation MSE sum -----------------------------------------
    k2 = functools.partial(_pass2_kernel, block_rows=block_rows,
                           blocks_per_core=bpc, n_rows=B, needs_mask=needs_mask)
    sq_part = pl.pallas_call(
        k2,
        out_shape=part_shape,
        grid=grid,
        in_specs=[pl.BlockSpec(memory_space=pltpu.MemorySpace.SMEM), tile, tile],
        out_specs=part_spec,
        scratch_shapes=[pltpu.VMEM((8, c_block), jnp.float32)],
        compiler_params=cparams,
    )(half_inv_t, student_logits, teacher_logits)

    distill_loss = 0.25 * jnp.sum(sq_part[::8, 0]) / n_elems
    ce_loss = bce_sum / n_elems
    return alpha * distill_loss + (1.0 - alpha) * ce_loss


# ---------------------------------------------------------------- reference --

def _reference_loss(s, t, y, base_temperature=5.0, min_temperature=1.0,
                    alpha=0.5):
    s, t, y = s.astype(jnp.float32), t.astype(jnp.float32), y.astype(jnp.float32)
    disc = jnp.mean(jnp.abs(t - s))
    temp = jnp.maximum(base_temperature / (1.0 + disc), min_temperature)
    sp = jax.nn.sigmoid(s / temp)
    tp = jax.nn.sigmoid(t / temp)
    distill = jnp.mean((sp - tp) ** 2)
    ce = jnp.mean(jnp.maximum(s, 0.0) - s * y + jnp.log1p(jnp.exp(-jnp.abs(s))))
    return alpha * distill + (1.0 - alpha) * ce


# --------------------------------------------------------------------- main --

if __name__ == "__main__":
    base_temperature = 5.0
    alpha = 0.5

    key = jax.random.PRNGKey(0)
    k_s, k_t, k_y, k_s2, k_t2, k_y2 = jax.random.split(key, 6)

    # --- primary small test (fused single-call path, f32) --------------------
    B, C = 16, 128
    student_logits = jax.random.normal(k_s, (B, C), dtype=jnp.float32)
    teacher_logits = jax.random.normal(k_t, (B, C), dtype=jnp.float32)
    true_labels = jax.random.bernoulli(k_y, 0.3, (B, C)).astype(jnp.float32)

    loss_fn = jax.jit(functools.partial(
        multilabel_distillation_loss,
        base_temperature=base_temperature, alpha=alpha))
    loss = jax.block_until_ready(loss_fn(student_logits, teacher_logits,
                                         true_labels))
    ref = _reference_loss(student_logits, teacher_logits, true_labels,
                          base_temperature=base_temperature, alpha=alpha)
    assert jnp.allclose(loss, ref, rtol=1e-5, atol=1e-6), (loss, ref)

    # --- secondary test: two-pass path, ragged batch, bf16 logits, int8 labels
    B2, C2 = 50, 96
    s2 = jax.random.normal(k_s2, (B2, C2), dtype=jnp.bfloat16)
    t2 = jax.random.normal(k_t2, (B2, C2), dtype=jnp.bfloat16)
    y2 = jax.random.bernoulli(k_y2, 0.3, (B2, C2)).astype(jnp.int8)

    loss_fn2 = jax.jit(functools.partial(
        multilabel_distillation_loss,
        base_temperature=base_temperature, alpha=alpha, fuse=False))
    loss2 = jax.block_until_ready(loss_fn2(s2, t2, y2))
    ref2 = _reference_loss(s2, t2, y2, base_temperature=base_temperature,
                           alpha=alpha)
    assert jnp.allclose(loss2, ref2, rtol=1e-4, atol=1e-5), (loss2, ref2)

    print("KERNEL_OK")
</pallas_src>

<mosaic_0001>
module attributes {stable_mosaic.version = 11 : i64} {
  func.func @_fused_kernel(%arg0: i32, %arg1: i32, %arg2: memref<16x128xf32, #tpu.memory_space<vmem>>, %arg3: memref<16x128xf32, #tpu.memory_space<vmem>>, %arg4: memref<16x128xf32, #tpu.memory_space<vmem>>, %arg5: memref<8x128xf32, #tpu.memory_space<vmem>>, %arg6: memref<16x128xf32, #tpu.memory_space<vmem>>, %arg7: memref<16x128xf32, #tpu.memory_space<vmem>>, %arg8: memref<8x128xf32, #tpu.memory_space<vmem>>, %arg9: memref<8x128xf32, #tpu.memory_space<vmem>>, %arg10: memref<8x128xf32, #tpu.memory_space<vmem>>, %arg11: memref<1xf32, #tpu.memory_space<smem>>) attributes {dimension_semantics = [#tpu.dimension_semantics<arbitrary>, #tpu.dimension_semantics<arbitrary>], iteration_bounds = array<i64: 2, 1>, scalar_prefetch = 0 : i64, scratch_operands = 6 : i64, tpu.core_type = #tpu.core_type<tc>, window_params = [{transform_indices = @transform_0, window_bounds = array<i64: 16, 128>}, {transform_indices = @transform_1, window_bounds = array<i64: 16, 128>}, {transform_indices = @transform_2, window_bounds = array<i64: 16, 128>}, {pipeline_mode = #tpu.pipeline_mode<synchronous>, transform_indices = @transform_3, window_bounds = array<i64: 8, 128>}]} {
    %c0_i32 = arith.constant 0 : i32
    %0 = arith.cmpi eq, %arg0, %c0_i32 : i32
    %c0_i32_0 = arith.constant 0 : i32
    %1 = arith.cmpi eq, %arg1, %c0_i32_0 : i32
    %2 = arith.andi %0, %1 : i1
    %3 = arith.extui %2 : i1 to i32
    %c0_i32_1 = arith.constant 0 : i32
    %4 = arith.cmpi ne, %3, %c0_i32_1 : i32
    scf.if %4 {
      %cst = arith.constant 0.000000e+00 : f32
      %13 = vector.broadcast %cst : f32 to vector<8x128xf32>
      %c0 = arith.constant 0 : index
      %c0_5 = arith.constant 0 : index
      %14 = vector.load %arg8[%c0, %c0_5] : memref<8x128xf32, #tpu.memory_space<vmem>>, vector<8x128xf32>
      tpu.vector_store %arg8[%c0, %c0_5], %13 {strides = array<i32>} : memref<8x128xf32, #tpu.memory_space<vmem>>, vector<8x128xf32>,
      %cst_6 = arith.constant 0.000000e+00 : f32
      %15 = vector.broadcast %cst_6 : f32 to vector<8x128xf32>
      %c0_7 = arith.constant 0 : index
      %c0_8 = arith.constant 0 : index
      %16 = vector.load %arg9[%c0_7, %c0_8] : memref<8x128xf32, #tpu.memory_space<vmem>>, vector<8x128xf32>
      tpu.vector_store %arg9[%c0_7, %c0_8], %15 {strides = array<i32>} : memref<8x128xf32, #tpu.memory_space<vmem>>, vector<8x128xf32>,
      %cst_9 = arith.constant 0.000000e+00 : f32
      %17 = vector.broadcast %cst_9 : f32 to vector<8x128xf32>
      %c0_10 = arith.constant 0 : index
      %c0_11 = arith.constant 0 : index
      %18 = vector.load %arg10[%c0_10, %c0_11] : memref<8x128xf32, #tpu.memory_space<vmem>>, vector<8x128xf32>
      tpu.vector_store %arg10[%c0_10, %c0_11], %17 {strides = array<i32>} : memref<8x128xf32, #tpu.memory_space<vmem>>, vector<8x128xf32>,
    } else {
    }
    %c16_i32 = arith.constant 16 : i32
    %5 = arith.muli %arg1, %c16_i32 : i32
    %6 = tpu.assume_multiple %5, 16 : i32
    %c0_i32_2 = arith.constant 0 : i32
    %7 = arith.cmpi eq, %arg0, %c0_i32_2 : i32
    %8 = arith.extui %7 : i1 to i32
    %c0_i32_3 = arith.constant 0 : i32
    %9 = arith.cmpi ne, %8, %c0_i32_3 : i32
    scf.if %9 {
      %c0 = arith.constant 0 : index
      %c0_5 = arith.constant 0 : index
      %13 = vector.load %arg2[%c0, %c0_5] : memref<16x128xf32, #tpu.memory_space<vmem>>, vector<16x128xf32>
      %c0_6 = arith.constant 0 : index
      %c0_7 = arith.constant 0 : index
      %14 = vector.load %arg3[%c0_6, %c0_7] : memref<16x128xf32, #tpu.memory_space<vmem>>, vector<16x128xf32>
      %15 = arith.index_cast %6 : i32 to index
      %c0_8 = arith.constant 0 : index
      %16 = vector.load %arg6[%15, %c0_8] : memref<16x128xf32, #tpu.memory_space<vmem>>, vector<16x128xf32>
      tpu.vector_store %arg6[%15, %c0_8], %13 {strides = array<i32>} : memref<16x128xf32, #tpu.memory_space<vmem>>, vector<16x128xf32>,
      %17 = arith.index_cast %6 : i32 to index
      %c0_9 = arith.constant 0 : index
      %18 = vector.load %arg7[%17, %c0_9] : memref<16x128xf32, #tpu.memory_space<vmem>>, vector<16x128xf32>
      tpu.vector_store %arg7[%17, %c0_9], %14 {strides = array<i32>} : memref<16x128xf32, #tpu.memory_space<vmem>>, vector<16x128xf32>,
      %c0_10 = arith.constant 0 : index
      %c0_11 = arith.constant 0 : index
      %19 = vector.load %arg4[%c0_10, %c0_11] : memref<16x128xf32, #tpu.memory_space<vmem>>, vector<16x128xf32>
      %c0_12 = arith.constant 0 : index
      %c0_13 = arith.constant 0 : index
      %20 = vector.load %arg8[%c0_12, %c0_13] : memref<8x128xf32, #tpu.memory_space<vmem>>, vector<8x128xf32>
      %21 = arith.subf %14, %13 : vector<16x128xf32>
      %22 = math.absf %21 : vector<16x128xf32>
      %23 = vector.shape_cast %22 : vector<16x128xf32> to vector<2x8x128xf32>
      %cst = arith.constant dense<0.000000e+00> : vector<8x128xf32>
      %24 = vector.multi_reduction <add>, %23, %cst [0] : vector<2x8x128xf32> to vector<8x128xf32>
      %25 = arith.addf %20, %24 : vector<8x128xf32>
      %c0_14 = arith.constant 0 : index
      %c0_15 = arith.constant 0 : index
      %26 = vector.load %arg8[%c0_14, %c0_15] : memref<8x128xf32, #tpu.memory_space<vmem>>, vector<8x128xf32>
      tpu.vector_store %arg8[%c0_14, %c0_15], %25 {strides = array<i32>} : memref<8x128xf32, #tpu.memory_space<vmem>>, vector<8x128xf32>,
      %c0_16 = arith.constant 0 : index
      %c0_17 = arith.constant 0 : index
      %27 = vector.load %arg9[%c0_16, %c0_17] : memref<8x128xf32, #tpu.memory_space<vmem>>, vector<8x128xf32>
      %cst_18 = arith.constant 0.000000e+00 : f32
      %28 = vector.broadcast %cst_18 : f32 to vector<16x128xf32>
      %29 = arith.maximumf %13, %28 : vector<16x128xf32>
      %30 = arith.mulf %13, %19 : vector<16x128xf32>
      %31 = arith.subf %29, %30 : vector<16x128xf32>
      %32 = math.absf %13 : vector<16x128xf32>
      %cst_19 = arith.constant 0.000000e+00 : f32
      %33 = vector.broadcast %cst_19 : f32 to vector<16x128xf32>
      %34 = arith.subf %33, %32 : vector<16x128xf32>
      %35 = math.exp %34 : vector<16x128xf32>
      %36 = math.log1p %35 : vector<16x128xf32>
      %37 = arith.addf %31, %36 : vector<16x128xf32>
      %38 = vector.shape_cast %37 : vector<16x128xf32> to vector<2x8x128xf32>
      %cst_20 = arith.constant dense<0.000000e+00> : vector<8x128xf32>
      %39 = vector.multi_reduction <add>, %38, %cst_20 [0] : vector<2x8x128xf32> to vector<8x128xf32>
      %40 = arith.addf %27, %39 : vector<8x128xf32>
      %c0_21 = arith.constant 0 : index
      %c0_22 = arith.constant 0 : index
      %41 = vector.load %arg9[%c0_21, %c0_22] : memref<8x128xf32, #tpu.memory_space<vmem>>, vector<8x128xf32>
      tpu.vector_store %arg9[%c0_21, %c0_22], %40 {strides = array<i32>} : memref<8x128xf32, #tpu.memory_space<vmem>>, vector<8x128xf32>,
      %c0_i32_23 = arith.constant 0 : i32
      %42 = arith.cmpi eq, %arg1, %c0_i32_23 : i32
      %43 = arith.extui %42 : i1 to i32
      %c0_i32_24 = arith.constant 0 : i32
      %44 = arith.cmpi ne, %43, %c0_i32_24 : i32
      scf.if %44 {
        %c0_25 = arith.constant 0 : index
        %c0_26 = arith.constant 0 : index
        %45 = vector.load %arg8[%c0_25, %c0_26] : memref<8x128xf32, #tpu.memory_space<vmem>>, vector<8x128xf32>
        %46 = vector.shape_cast %45 : vector<8x128xf32> to vector<1x8x128xf32>
        %cst_27 = arith.constant dense<0.000000e+00> : vector<1xf32>
        %47 = vector.multi_reduction <add>, %46, %cst_27 [1, 2] : vector<1x8x128xf32> to vector<1xf32>
        %48 = vector.shape_cast %47 : vector<1xf32> to vector<1x1x1xf32>
        %49 = vector.extract %48[0, 0, 0] : f32 from vector<1x1x1xf32>
        %cst_28 = arith.constant 2.048000e+03 : f32
        %50 = arith.divf %49, %cst_28 : f32
        %cst_29 = arith.constant 1.000000e+00 : f32
        %51 = arith.addf %cst_29, %50 : f32
        %cst_30 = arith.constant 5.000000e+00 : f32
        %52 = arith.divf %cst_30, %51 : f32
        %cst_31 = arith.constant 1.000000e+00 : f32
        %53 = arith.maximumf %52, %cst_31 : f32
        %cst_32 = arith.constant 5.000000e-01 : f32
        %54 = arith.divf %cst_32, %53 : f32
        %c0_33 = arith.constant 0 : index
        %55 = memref.load %arg11[%c0_33] : memref<1xf32, #tpu.memory_space<smem>>
        memref.store %54, %arg11[%c0_33] : memref<1xf32, #tpu.memory_space<smem>>
      } else {
      }
    } else {
    }
    %c1_i32 = arith.constant 1 : i32
    %10 = arith.cmpi eq, %arg0, %c1_i32 : i32
    %11 = arith.extui %10 : i1 to i32
    %c0_i32_4 = arith.constant 0 : i32
    %12 = arith.cmpi ne, %11, %c0_i32_4 : i32
    scf.if %12 {
      %c0 = arith.constant 0 : index
      %13 = memref.load %arg11[%c0] : memref<1xf32, #tpu.memory_space<smem>>
      %14 = arith.index_cast %6 : i32 to index
      %c0_5 = arith.constant 0 : index
      %15 = vector.load %arg6[%14, %c0_5] : memref<16x128xf32, #tpu.memory_space<vmem>>, vector<16x128xf32>
      %16 = arith.index_cast %6 : i32 to index
      %c0_6 = arith.constant 0 : index
      %17 = vector.load %arg7[%16, %c0_6] : memref<16x128xf32, #tpu.memory_space<vmem>>, vector<16x128xf32>
      %18 = vector.broadcast %13 : f32 to vector<16x128xf32>
      %19 = arith.mulf %15, %18 : vector<16x128xf32>
      %20 = math.tanh %19 : vector<16x128xf32>
      %21 = vector.broadcast %13 : f32 to vector<16x128xf32>
      %22 = arith.mulf %17, %21 : vector<16x128xf32>
      %23 = math.tanh %22 : vector<16x128xf32>
      %24 = arith.subf %20, %23 : vector<16x128xf32>
      %c0_7 = arith.constant 0 : index
      %c0_8 = arith.constant 0 : index
      %25 = vector.load %arg10[%c0_7, %c0_8] : memref<8x128xf32, #tpu.memory_space<vmem>>, vector<8x128xf32>
      %26 = arith.mulf %24, %24 : vector<16x128xf32>
      %27 = vector.shape_cast %26 : vector<16x128xf32> to vector<2x8x128xf32>
      %cst = arith.constant dense<0.000000e+00> : vector<8x128xf32>
      %28 = vector.multi_reduction <add>, %27, %cst [0] : vector<2x8x128xf32> to vector<8x128xf32>
      %29 = arith.addf %25, %28 : vector<8x128xf32>
      %c0_9 = arith.constant 0 : index
      %c0_10 = arith.constant 0 : index
      %30 = vector.load %arg10[%c0_9, %c0_10] : memref<8x128xf32, #tpu.memory_space<vmem>>, vector<8x128xf32>
      tpu.vector_store %arg10[%c0_9, %c0_10], %29 {strides = array<i32>} : memref<8x128xf32, #tpu.memory_space<vmem>>, vector<8x128xf32>,
      %c0_i32_11 = arith.constant 0 : i32
      %31 = arith.cmpi eq, %arg1, %c0_i32_11 : i32
      %32 = arith.extui %31 : i1 to i32
      %c0_i32_12 = arith.constant 0 : i32
      %33 = arith.cmpi ne, %32, %c0_i32_12 : i32
      scf.if %33 {
        %c0_13 = arith.constant 0 : index
        %c0_14 = arith.constant 0 : index
        %34 = vector.load %arg10[%c0_13, %c0_14] : memref<8x128xf32, #tpu.memory_space<vmem>>, vector<8x128xf32>
        %35 = vector.shape_cast %34 : vector<8x128xf32> to vector<1x8x128xf32>
        %cst_15 = arith.constant dense<0.000000e+00> : vector<1xf32>
        %36 = vector.multi_reduction <add>, %35, %cst_15 [1, 2] : vector<1x8x128xf32> to vector<1xf32>
        %37 = vector.shape_cast %36 : vector<1xf32> to vector<1x1x1xf32>
        %38 = vector.extract %37[0, 0, 0] : f32 from vector<1x1x1xf32>
        %cst_16 = arith.constant 2.500000e-01 : f32
        %39 = arith.mulf %cst_16, %38 : f32
        %cst_17 = arith.constant 2.048000e+03 : f32
        %40 = arith.divf %39, %cst_17 : f32
        %c0_18 = arith.constant 0 : index
        %c0_19 = arith.constant 0 : index
        %41 = vector.load %arg9[%c0_18, %c0_19] : memref<8x128xf32, #tpu.memory_space<vmem>>, vector<8x128xf32>
        %42 = vector.shape_cast %41 : vector<8x128xf32> to vector<1x8x128xf32>
        %cst_20 = arith.constant dense<0.000000e+00> : vector<1xf32>
        %43 = vector.multi_reduction <add>, %42, %cst_20 [1, 2] : vector<1x8x128xf32> to vector<1xf32>
        %44 = vector.shape_cast %43 : vector<1xf32> to vector<1x1x1xf32>
        %45 = vector.extract %44[0, 0, 0] : f32 from vector<1x1x1xf32>
        %cst_21 = arith.constant 2.048000e+03 : f32
        %46 = arith.divf %45, %cst_21 : f32
        %cst_22 = arith.constant 5.000000e-01 : f32
        %47 = arith.mulf %cst_22, %40 : f32
        %cst_23 = arith.constant 5.000000e-01 : f32
        %48 = arith.mulf %cst_23, %46 : f32
        %49 = arith.addf %47, %48 : f32
        %50 = vector.broadcast %49 : f32 to vector<8x128xf32>
        %c0_24 = arith.constant 0 : index
        %c0_25 = arith.constant 0 : index
        %51 = vector.load %arg5[%c0_24, %c0_25] : memref<8x128xf32, #tpu.memory_space<vmem>>, vector<8x128xf32>
        tpu.vector_store %arg5[%c0_24, %c0_25], %50 {strides = array<i32>} : memref<8x128xf32, #tpu.memory_space<vmem>>, vector<8x128xf32>,
      } else {
      }
    } else {
    }
    return
  }
  func.func @transform_0(%arg0: i32, %arg1: i32) -> (i32, i32) {
    %c1_i32 = arith.constant 1 : i32
    %0 = arith.subi %c1_i32, %arg0 : i32
    %1 = arith.muli %arg1, %0 : i32
    %c0_i32 = arith.constant 0 : i32
    %c0_i32_0 = arith.constant 0 : i32
    return %1, %c0_i32 : i32, i32
  }
  func.func @transform_1(%arg0: i32, %arg1: i32) -> (i32, i32) {
    %c1_i32 = arith.constant 1 : i32
    %0 = arith.subi %c1_i32, %arg0 : i32
    %1 = arith.muli %arg1, %0 : i32
    %c0_i32 = arith.constant 0 : i32
    %c0_i32_0 = arith.constant 0 : i32
    return %1, %c0_i32 : i32, i32
  }
  func.func @transform_2(%arg0: i32, %arg1: i32) -> (i32, i32) {
    %c1_i32 = arith.constant 1 : i32
    %0 = arith.subi %c1_i32, %arg0 : i32
    %1 = arith.muli %arg1, %0 : i32
    %c0_i32 = arith.constant 0 : i32
    %c0_i32_0 = arith.constant 0 : i32
    return %1, %c0_i32 : i32, i32
  }
  func.func @transform_3(%arg0: i32, %arg1: i32) -> (i32, i32) {
    %c0_i32 = arith.constant 0 : i32
    %c0_i32_0 = arith.constant 0 : i32
    %c0_i32_1 = arith.constant 0 : i32
    return %c0_i32, %c0_i32_0 : i32, i32
  }
}

</mosaic_0001>

<bundles_post_ra>
// kernel: multilabel_distillation_loss.1
= control target key start
LH: loop header
LB: loop body
LE: loop exit
PB: predicated region body
PF: predicated region fallthrough
CT: control target
= control target key end

     0   :  { %8 = vsyncpa [#allocation9], 0  ;;  %s938_s0 = inlined_call_operand.hbm [shape: f32[16,128], index: 0, kind: input, shape index: {}]   ;;  %s939_s1 = inlined_call_operand.hbm [shape: f32[16,128], index: 1, kind: input, shape index: {}]   ;;  %s940_s2 = inlined_call_operand.hbm [shape: f32[16,128], index: 2, kind: input, shape index: {}]   ;;  %s941_s3 = inlined_call_operand.vmem [shape: f32[8,128], index: 3, kind: output, shape index: {}]  }
   0x1   :  { %10 = vsyncpa [#allocation9 + $0x1], 0 }
   0x2   :  { %11 = vsyncpa [#allocation11], 0 }
   0x3   :  { %13 = vsyncpa [#allocation11 + $0x1], 0  ;;  %s802_s12 = smov 0   ;;  %s804_s13 = smov 0  }
   0x4   :  { %s806_s14 = smov 0  }
   0x5 LB: > { %s553_s15 = sadd.s32 4294967295, %s773_s14   ;;  %p601_p0 = scmp.lt.s32.totalorder %s773_s14, 2  ;;  %s773_s14 = sphi %s806_s14, %s19_s14   ;;  %s769_s13 = sphi %s804_s13, %s951_s13   ;;  %s765_s12 = sphi %s802_s12, %s950_s12  }
   0x6   : > { %p602_p1 = scmp.eq.s32.totalorder %s773_s14, 0  ;;  %s183_s16 = sand.u32 1, %s773_s14  }
   0x7   : > { %s775_s18 = smov [#allocation10]   ;;  %s827_s20 = scalar_lea.sflag [#allocation11], %s183_s16 }
   0x8   : > { %p821_p2 = pnand %p602_p1, %p601_p0  ;;  %s196_s19 = sshll.u32 %s775_s18, 4  ;;  %s197_s19 = int_to_ptr.vmem [resolvable:$true] %s196_s19 }
   0x9   : > { %s659_s23 = scalar_lea.hbm %s939_s1, 256 }
   0xa   : > { %p660_p5 = scmp.ne.s32.totalorder %s939_s1, %s659_s23  ;;  %p837_p6 = pneg %p821_p2 }
   0xb   : > { %p666_p9 = scmp.lt.u32.totalorder %s659_s23, %s939_s1 }
   0xc   : > { %p662_p7 = pnand %p837_p6, %p660_p5 }
   0xe   : > { %p663_p8 = pneg %p662_p7 }
  0x10   : > { %p668_p10 = pnand %p666_p9, %p663_p8 }
  0x12   : > { %671 = shalt.err (!%p668_p10)
}
  0x13   : > { %s672_s29 = scalar_lea.vmem %s197_s19, 256  ;;  %s679_s30 = scalar_lea.vmem %s197_s19, 512 }
  0x14   : > { %p673_p11 = scmp.ne.s32.totalorder %s197_s19, %s672_s29  ;;  %p680_p0 = scmp.lt.s32.totalorder %s197_s19, %s197_s19 }
  0x15   : > { %p681_p1 = scmp.lt.s32.totalorder %s679_s30, %s672_s29 }
  0x16   : > { %p675_p12 = pnand %p673_p11, %p837_p6 }
  0x17   : > { %p682_p3 = por %p681_p1, %p680_p0 }
  0x18   : > { %p676_p13 = pneg %p675_p12 }
  0x1a   : > { %p683_p4 = pnand %p682_p3, %p676_p13 }
  0x1c   : > { %686 = shalt.err (!%p683_p4)
}
  0x1d   : > { %s776_s4 = smov 128   ;;  %s777_s5 = smov 8  }
  0x1e   : > { %597 = dma.hbm_to_vmem [thread:$0]  (!%p821_p2), %s939_s1, 256, %s197_s19, %s827_s20, %s776_s4, %s776_s4, %s777_s5  }
  0x1f   : > { %p944_p5 = scmp.lt.s32.totalorder %s773_s14, 3  ;;  %p945_p7 = scmp.ge.s32.totalorder %s773_s14, 1 }
  0x20   : > { %s31_s9 = sadd.s32 1, %s769_s13  ;;  %s778_s10 = smov [#allocation8]  }
  0x21   : > { %p861_p3 = pnand %p945_p7, %p944_p5  ;;  %s173_s11 = sshll.u32 %s778_s10, 4  ;;  %s174_s11 = int_to_ptr.vmem [resolvable:$true] %s173_s11 }
  0x22   : > { %p866_p4 = scmp.ge.s32.totalorder %s31_s9, 2  ;;  %s687_s22 = scalar_lea.hbm %s938_s0, 256 }
  0x23   : > { %s946_s8 = scalar_select %p861_p3, 1, 0 }
  0x24   : > { %s947_s16 = scalar_select %p866_p4, 1, 0 }
  0x25   : > { %p688_p8 = scmp.ne.s32.totalorder %s938_s0, %s687_s22  ;;  %p694_p11 = scmp.lt.u32.totalorder %s687_s22, %s938_s0 }
  0x27   : > { %p690_p9 = pnand %p688_p8, %p837_p6 }
  0x29   : > { %p691_p10 = pneg %p690_p9 }
  0x2b   : > { %p696_p12 = pnand %p694_p11, %p691_p10 }
  0x2d   : > { %699 = shalt.err (!%p696_p12)
}
  0x2e   : > { %s700_s27 = scalar_lea.vmem %s174_s11, 256  ;;  %s707_s28 = scalar_lea.vmem %s174_s11, 512 }
  0x2f   : > { %p701_p13 = scmp.ne.s32.totalorder %s174_s11, %s700_s27  ;;  %p708_p5 = scmp.lt.s32.totalorder %s174_s11, %s174_s11 }
  0x30   : > { %p709_p7 = scmp.lt.s32.totalorder %s707_s28, %s700_s27 }
  0x31   : > { %p703_p0 = pnand %p701_p13, %p837_p6 }
  0x32   : > { %p710_p3 = por %p709_p7, %p708_p5 }
  0x33   : > { %p704_p1 = pneg %p703_p0 }
  0x35   : > { %p711_p4 = pnand %p710_p3, %p704_p1 }
  0x37   : > { %714 = shalt.err (!%p711_p4)
}
  0x38   : > { %594 = dma.hbm_to_vmem [thread:$0]  (!%p821_p2), %s938_s0, 256, %s174_s11, [#allocation9], %s776_s4, %s776_s4, %s777_s5  }
  0x39   : > { %p948_p8 = scmp.ne.s32.totalorder %s947_s16, 0  ;;  %s779_s6 = smov [#allocation12]  }
  0x3a   : > { %s219_s7 = sshll.u32 %s779_s6, 4  ;;  %s715_s21 = scalar_lea.hbm %s940_s2, 256  ;;  %s220_s7 = int_to_ptr.vmem [resolvable:$true] %s219_s7 }
  0x3b   : > { %s953_s9 = smov (%p948_p8, %s31_s9), 0  ;;  %p716_p3 = scmp.ne.s32.totalorder %s940_s2, %s715_s21 }
  0x3c   : > { %p722_p10 = scmp.lt.u32.totalorder %s715_s21, %s940_s2 }
  0x3d   : > { %p718_p4 = pnand %p716_p3, %p837_p6 }
  0x3f   : > { %p719_p9 = pneg %p718_p4 }
  0x41   : > { %p724_p11 = pnand %p722_p10, %p719_p9 }
  0x43   : > { %727 = shalt.err (!%p724_p11)
}
  0x44   : > { %s728_s11 = scalar_lea.vmem %s220_s7, 256  ;;  %s735_s16 = scalar_lea.vmem %s220_s7, 512 }
  0x45   : > { %p729_p12 = scmp.ne.s32.totalorder %s220_s7, %s728_s11  ;;  %p736_p1 = scmp.lt.s32.totalorder %s220_s7, %s220_s7 }
  0x46   : > { %p737_p5 = scmp.lt.s32.totalorder %s735_s16, %s728_s11 }
  0x47   : > { %p731_p13 = pnand %p729_p12, %p837_p6 }
  0x48   : > { %p738_p7 = por %p737_p5, %p736_p1 }
  0x49   : > { %p732_p0 = pneg %p731_p13 }
  0x4b   : > { %p739_p8 = pnand %p738_p7, %p732_p0 }
  0x4d   : > { %742 = shalt.err (!%p739_p8)
}
  0x4e   : > { %600 = dma.hbm_to_vmem [thread:$0]  (!%p821_p2), %s940_s2, 256, %s220_s7, %s827_s20, %s776_s4, %s776_s4, %s777_s5  }
  0x4f   : > { %p949_p3 = scmp.ne.s32.totalorder %s946_s8, 0 }
  0x50   : > { %p605_p6 = scmp.eq.s32.totalorder (!%p949_p3), %s553_s15, 0 }
  0x51   : > { %231 = sbr.rel (%p949_p3) target bundleno = 698 (0x2ba), region = 32 }
  0x58   : > { %756 = dma.done.wait (%p605_p6), [#allocation9], 256  }
  0x59   : > { %758 = vsyncadd (%p605_p6), [#allocation9], 4294967040  ;;  %s242_s26 = sand.u32 1, %s553_s15  }
  0x5a   : > { %s243_s17 = scalar_lea.sflag [#allocation11], %s242_s26 }
  0x5b   : > { %760 = dma.done.wait (%p605_p6), %s243_s17, 512  }
  0x5c   : > { %762 = vsyncadd (%p605_p6), %s243_s17, 4294966784  ;;  %p292_p4 = scmp.eq.s32.totalorder %s765_s12, 0 }
  0x5d   : > { %v780_v0 = vmov (%p292_p4), 0.0  }
  0x5e   : > { %297 = sbr.rel (!%p292_p4) target bundleno = 101 (0x65), region = 48  ;;  %298 = vst [vmem:[#allocation4] sm:$0xff] (%p292_p4), %v780_v0  ;;  %299 = vst [vmem:[#allocation5] sm:$0xff] (%p292_p4), %v780_v0 }
  0x5f   : > { %300 = vst [vmem:[#allocation6] sm:$0xff] (%p292_p4), %v780_v0 }
  0x65 PF: > { %p564_p2 = scmp.ne.s32.totalorder %s765_s12, 0 }
  0x66   : > { %v305_v1 = vld [vmem:[#allocation8] sm:$0xff] (!%p564_p2)  ;;  %v306_v2 = vld [vmem:[#allocation8 + $0x8] sm:$0xff] (!%p564_p2)  ;;  %v325_v46 = vld [vmem:[#allocation5] sm:$0xff] (!%p564_p2)  ;;  %s781_s28 = smov (!%p564_p2), 1.0  }
  0x67   : > { %304 = sbr.rel (%p564_p2) target bundleno = 450 (0x1c2), region = 52  ;;  %v307_v3 = vld [vmem:[#allocation10] sm:$0xff] (!%p564_p2)  ;;  %v308_v4 = vld [vmem:[#allocation10 + $0x8] sm:$0xff] (!%p564_p2)  ;;  %310 = vst [vmem:[#allocation2] sm:$0xff] (!%p564_p2), %v305_v1  ;;  %311 = vst [vmem:[#allocation2 + $0x8] sm:$0xff] (!%p564_p2), %v306_v2  ;;  %v326_v27 = vmax.f32 (!%p564_p2), %v305_v1, 0.0 }
  0x68   : > { %313 = vst [vmem:[#allocation3] sm:$0xff] (!%p564_p2), %v307_v3  ;;  %v318_v5 = vsub.f32 (!%p564_p2), %v307_v3, %v305_v1  ;;  %314 = vst [vmem:[#allocation3 + $0x8] sm:$0xff] (!%p564_p2), %v308_v4  ;;  %v319_v6 = vsub.f32 (!%p564_p2), %v308_v4, %v306_v2  ;;  %v332_v7 = vand.u32 (!%p564_p2), 2147483647, %v305_v1  ;;  %v333_v9 = vand.u32 (!%p564_p2), 2147483647, %v306_v2 }
  0x69   : > { %v317_v12 = vld [vmem:[#allocation4] sm:$0xff] (!%p564_p2)  ;;  %v315_v24 = vld [vmem:[#allocation12] sm:$0xff] (!%p564_p2)  ;;  %v327_v31 = vmax.f32 (!%p564_p2), %v306_v2, 0.0 }
  0x6a   : > { %v320_v8 = vand.u32 (!%p564_p2), 2147483647, %v318_v5  ;;  %v321_v10 = vand.u32 (!%p564_p2), 2147483647, %v319_v6  ;;  %v334_v11 = vsub.f32 (!%p564_p2), 0.0, %v332_v7  ;;  %v335_v13 = vsub.f32 (!%p564_p2), 0.0, %v333_v9 }
  0x6b   : > { %v316_v25 = vld [vmem:[#allocation12 + $0x8] sm:$0xff] (!%p564_p2)  ;;  %v328_v28 = vmul.f32 (!%p564_p2), %v315_v24, %v305_v1 }
  0x6c   : > { %v322_v14 = vadd.f32 (!%p564_p2), %v321_v10, %v320_v8  ;;  %v336_v15 = vmul.f32 (!%p564_p2), 1.442695, %v334_v11  ;;  %v338_v16 = vmul.f32 (!%p564_p2), 1.442695, %v335_v13  ;;  %v329_v32 = vmul.f32 (!%p564_p2), %v316_v25, %v306_v2 }
  0x6d   : > { %v330_v36 = vsub.f32 (!%p564_p2), %v326_v27, %v328_v28 }
  0x6e   : > { %v323_v17 = vadd.f32 %v322_v14, %v317_v12  ;;  %639 = vpow2.f32 %v336_v15  ;;  %v331_v39 = vsub.f32 %v327_v31, %v329_v32 }
  0x6f   : > { %641 = vpow2.f32 %v338_v16 }
  0x70   : > { %324 = vst [vmem:[#allocation4] sm:$0xff] %v323_v17  ;;  %367 = vadd.xlane.f32.xlu0 %v323_v17 }
  0x78   : > { %v640_v18 = vpop.eup %639 }
  0x79   : > { %v642_v19 = vpop.eup %641  ;;  %v340_v20 = vadd.f32 1.0, %v640_v18  ;;  %v343_v22 = vmul.f32 -0.5, %v640_v18  ;;  %v346_v29 = vand.u32 2147483647, %v640_v18 }
  0x7a   : > { %v349_v21 = vadd.f32 1.0, %v642_v19  ;;  %v352_v23 = vmul.f32 -0.5, %v642_v19  ;;  %v355_v33 = vand.u32 2147483647, %v642_v19 }
  0x7b   : > { %643 = vlog2.f32 %v340_v20  ;;  %v344_v26 = vadd.f32 1.0, %v343_v22  ;;  %vm347_vm0 = vcmp.lt.f32.partialorder %v346_v29, 0.0004427343 }
  0x7c   : > { %645 = vlog2.f32 %v349_v21  ;;  %v353_v30 = vadd.f32 1.0, %v352_v23  ;;  %vm356_vm1 = vcmp.lt.f32.partialorder %v355_v33, 0.0004427343 }
  0x7d   : > { %v345_v34 = vmul.f32 %v640_v18, %v344_v26 }
  0x7e   : > { %v354_v37 = vmul.f32 %v642_v19, %v353_v30 }
  0x85   : > { %v644_v35 = vpop.eup %643 }
  0x86   : > { %v646_v38 = vpop.eup %645  ;;  %v342_v40 = vmul.f32 0.6931472, %v644_v35 }
  0x87   : > { %v351_v41 = vmul.f32 0.6931472, %v646_v38 }
  0x88   : > { %v348_v42 = vsel %vm347_vm0, %v345_v34, %v342_v40 }
  0x89   : > { %v357_v43 = vsel %vm356_vm1, %v354_v37, %v351_v41  ;;  %v358_v44 = vadd.f32 %v348_v42, %v330_v36 }
  0x8a   : > { %v359_v45 = vadd.f32 %v357_v43, %v331_v39 }
  0x8c   : > { %v360_v47 = vadd.f32 %v359_v45, %v358_v44 }
  0x8e   : > { %v361_v48 = vadd.f32 %v360_v47, %v325_v46 }
  0x90   : > { %362 = vst [vmem:[#allocation5] sm:$0xff] %v361_v48 }
  0xfd   : > { %v368_v49 = vpop.xlane.xlu0 %367 }
  0xfe   : > { %v369_v50 = vrot.slane %v368_v49, 4 }
 0x100   : > { %v370_v51 = vadd.f32 %v369_v50, %v368_v49 }
 0x102   : > { %v371_v52 = vrot.slane %v370_v51, 2 }
 0x104   : > { %v372_v53 = vadd.f32 %v371_v52, %v370_v51 }
 0x106   : > { %v373_v54 = vrot.slane %v372_v53, 1 }
 0x108   : > { %v374_v55 = vadd.f32 %v373_v54, %v372_v53 }
 0x10a   : > { %569 = vpush %v374_v55 }
 0x13b   : > { %s570_s15 = spop %569 }
 0x13c   : > { %s378_s20 = smul.f32 0.00048828125, %s570_s15 }
 0x13e   : > { %s379_s4 = sadd.f32 1.0, %s378_s20 }
 0x140   : > { %v380_v56 = vstv %s379_s4 }
 0x141   : > { %647 = vrcp.f32 %v380_v56 }
 0x14b   : > { %v648_v57 = vpop.eup %647 }
 0x14c   : > { %571 = vpush %v648_v57 }
 0x17d   : > { %s572_s5 = spop %571 }
 0x17e   : > { %s383_s8 = smul.f32 5.0, %s572_s5 }
 0x180   : > { %s384_s29 = smax.f32 %s781_s28, %s383_s8 }
 0x181   : > { %v385_v58 = vstv %s384_s29 }
 0x182   : > { %649 = vrcp.f32 %v385_v58 }
 0x18c   : > { %v650_v59 = vpop.eup %649 }
 0x18d   : > { %573 = vpush %v650_v59 }
 0x1be   : > { %s574_s30 = spop %573 }
 0x1bf   : > { %s388_s6 = smul.f32 0.5, %s574_s30 }
 0x1c1   : > { %390 = sst [smem:[#allocation7]] %s388_s6 }
 0x1c2 PF: > { %p565_p9 = scmp.ne.s32.totalorder %s765_s12, 1 }
 0x1c3   : > { %s395_s7 = sld [smem:[#allocation7]] (!%p565_p9)  ;;  %v397_v60 = vld [vmem:[#allocation2] sm:$0xff] (!%p565_p9)  ;;  %v398_v61 = vld [vmem:[#allocation2 + $0x8] sm:$0xff] (!%p565_p9)  ;;  %v400_v62 = vld [vmem:[#allocation3] sm:$0xff] (!%p565_p9) }
 0x1c4   : > { %394 = sbr.rel (%p565_p9) target bundleno = 698 (0x2ba), region = 60  ;;  %v401_v63 = vld [vmem:[#allocation3 + $0x8] sm:$0xff] (!%p565_p9)  ;;  %v413_v13 = vld [vmem:[#allocation6] sm:$0xff] (!%p565_p9)  ;;  %v436_v16 = vld [vmem:[#allocation5] sm:$0xff] (!%p565_p9) }
 0x1c9   : > { %v402_v0 = vstv (!%p565_p9), %s395_s7 }
 0x1ca   : > { %v403_v1 = vmul.f32 (!%p565_p9), %v402_v0, %v397_v60  ;;  %v404_v2 = vmul.f32 (!%p565_p9), %v402_v0, %v398_v61  ;;  %v407_v3 = vmul.f32 (!%p565_p9), %v402_v0, %v400_v62  ;;  %v408_v4 = vmul.f32 (!%p565_p9), %v402_v0, %v401_v63 }
 0x1cc   : > { %651 = vtanh.f32 %v403_v1 }
 0x1cd   : > { %653 = vtanh.f32 %v404_v2 }
 0x1ce   : > { %655 = vtanh.f32 %v407_v3 }
 0x1cf   : > { %657 = vtanh.f32 %v408_v4 }
 0x1d6   : > { %v652_v5 = vpop.eup %651 }
 0x1d7   : > { %v654_v6 = vpop.eup %653 }
 0x1d8   : > { %v656_v7 = vpop.eup %655 }
 0x1d9   : > { %v658_v8 = vpop.eup %657  ;;  %v411_v9 = vsub.f32 %v652_v5, %v656_v7 }
 0x1da   : > { %v412_v10 = vsub.f32 %v654_v6, %v658_v8 }
 0x1db   : > { %v414_v11 = vmul.f32 %v411_v9, %v411_v9 }
 0x1dc   : > { %v415_v12 = vmul.f32 %v412_v10, %v412_v10 }
 0x1de   : > { %v416_v14 = vadd.f32 %v415_v12, %v414_v11 }
 0x1e0   : > { %v417_v15 = vadd.f32 %v416_v14, %v413_v13 }
 0x1e2   : > { %418 = vst [vmem:[#allocation6] sm:$0xff] %v417_v15  ;;  %423 = vadd.xlane.f32.xlu0 %v417_v15 }
 0x1e6   : > { %437 = vadd.xlane.f32.xlu0 %v436_v16 }
 0x26f   : > { %v424_v17 = vpop.xlane.xlu0 %423 }
 0x270   : > { %v425_v18 = vrot.slane %v424_v17, 4 }
 0x272   : > { %v426_v19 = vadd.f32 %v425_v18, %v424_v17 }
 0x273   : > { %v438_v20 = vpop.xlane.xlu0 %437 }
 0x274   : > { %v427_v21 = vrot.slane %v426_v19, 2  ;;  %v439_v22 = vrot.slane %v438_v20, 4 }
 0x276   : > { %v440_v23 = vadd.f32 %v439_v22, %v438_v20  ;;  %v428_v24 = vadd.f32 %v427_v21, %v426_v19 }
 0x278   : > { %v441_v25 = vrot.slane %v440_v23, 2  ;;  %v429_v26 = vrot.slane %v428_v24, 1 }
 0x27a   : > { %v442_v27 = vadd.f32 %v441_v25, %v440_v23  ;;  %v430_v28 = vadd.f32 %v429_v26, %v428_v24 }
 0x27c   : > { %575 = vpush %v430_v28  ;;  %v443_v29 = vrot.slane %v442_v27, 1 }
 0x27e   : > { %v444_v30 = vadd.f32 %v443_v29, %v442_v27 }
 0x280   : > { %577 = vpush %v444_v30 }
 0x2ad   : > { %s576_s12 = spop %575 }
 0x2ae   : > { %s432_s10 = smul.f32 0.25, %s576_s12 }
 0x2b0   : > { %s435_s18 = smul.f32 0.00048828125, %s432_s10 }
 0x2b1   : > { %s578_s21 = spop %577 }
 0x2b2   : > { %s448_s22 = smul.f32 0.00048828125, %s578_s21 }
 0x2b3   : > { %s449_s23 = smul.f32 0.5, %s435_s18 }
 0x2b4   : > { %s450_s19 = smul.f32 0.5, %s448_s22 }
 0x2b6   : > { %s451_s24 = sadd.f32 %s450_s19, %s449_s23 }
 0x2b8   : > { %v452_v31 = vstv %s451_s24 }
 0x2b9   : > { %453 = vst [vmem:[%s941_s3] sm:$0xff] %v452_v31 }
 0x2ba PF: > { %s19_s14 = sadd.s32 1, %s773_s14   ;;  %s950_s12 = smov %s769_s13 }
 0x2bb   : > { %p16_p10 = scmp.ge.s32.totalorder %s19_s14, 4   ;;  %s951_s13 = smov %s953_s9 }
 0x2bd   :  { %18 = sbr.rel (!%p16_p10) target bundleno = 5 (0x5), region = 117 }
 0x2c4   :  { %465 = vsyncpa [#allocation9], 1 }
 0x2c5   :  { %467 = vsyncpa [#allocation9 + $0x1], 1 }
 0x2c6   :  { %468 = vsyncpa [#allocation11], 1 }
 0x2c7   :  { %470 = vsyncpa [#allocation11 + $0x1], 1 }

</bundles_post_ra>
